<compile_context>
chip_gen: v7x
topology: tpu7x:2x2x1
jax: 0.10.0
libtpu: 0.0.40
codegen_flags: <defaults>
</compile_context>

<pallas_src>
import jax
import jax.numpy as jnp
from jax.experimental import pallas as pl
from jax.experimental.pallas import tpu as pltpu


# ---------------------------------------------------------------------------
# Kernel
# ---------------------------------------------------------------------------
def _pointwise_conv_kernel(x_ref, w_ref, b_ref, o_ref, acc_ref):
    # x_ref: (1, tk, thw)  w_ref: (Cout, tk)  b_ref: (Cout, 1) f32
    # o_ref: (1, Cout, thw)  acc_ref: (Cout, thw) f32
    k = pl.program_id(2)

    @pl.when(k == 0)
    def _():
        acc_ref[...] = jnp.zeros_like(acc_ref)

    acc_ref[...] += jnp.dot(w_ref[...], x_ref[0],
                            preferred_element_type=jnp.float32)  # MXU, f32 accumulate

    @pl.when(k == pl.num_programs(2) - 1)
    def _():
        o_ref[0] = (acc_ref[...] + b_ref[...]).astype(o_ref.dtype)  # bias add in f32


# ---------------------------------------------------------------------------
# Sizing helpers
# ---------------------------------------------------------------------------
def _round_up(x, m):
    return ((x + m - 1) // m) * m


def _cdiv(a, b):
    return (a + b - 1) // b


def _sublane_gran(dtype):
    # sublane packing granularity: 8 for 4-byte, 16 for 2-byte, 32 for 1-byte dtypes
    return max(8, 32 // jnp.dtype(dtype).itemsize)


def _vmem_capacity_bytes():
    try:
        info = pltpu.get_tpu_info()
        cap = getattr(info, "vmem_capacity_bytes", None)
        if cap:
            return int(cap)
    except Exception:
        pass
    return 64 * 1024 * 1024  # conservative fallback == v7x physical VMEM


def _pick_k_tile(cin):
    """Contraction (Cin) tile.  Must divide Cin exactly so edge-block padding never
    leaks garbage rows/cols into the accumulation."""
    if cin <= 512:
        return cin
    for tk in (512, 256, 128):
        if cin % tk == 0:
            return tk
    return cin  # large, oddly-sized Cin: keep full K resident (rare)


def _step_vmem_bytes(thw, tk, cout, x_dtype, w_dtype, out_dtype):
    """Per-step VMEM footprint including sublane/lane padding, double-buffered
    weight/bias, the f32 accumulator scratch and a possible f32 dot-result temp."""
    bx = jnp.dtype(x_dtype).itemsize
    bw = jnp.dtype(w_dtype).itemsize
    bo = jnp.dtype(out_dtype).itemsize
    lane_thw = _round_up(thw, 128)
    lane_tk = _round_up(tk, 128)
    tk_sub = _round_up(tk, _sublane_gran(x_dtype))
    cout_o = _round_up(cout, _sublane_gran(out_dtype))
    cout_w = _round_up(cout, _sublane_gran(w_dtype))
    cout_f = _round_up(cout, 8)
    x_bytes = 2 * tk_sub * lane_thw * bx          # double-buffered activation tile
    o_bytes = 2 * cout_o * lane_thw * bo          # double-buffered output tile
    w_bytes = 2 * cout_w * lane_tk * bw           # weight slab (double-buffered by Pallas)
    b_bytes = 2 * cout_f * 128 * 4                # bias (kept f32)
    acc_bytes = cout_f * lane_thw * 4             # f32 accumulator scratch
    tmp_bytes = cout_f * lane_thw * 4             # f32 dot-result temp before +=
    return x_bytes + o_bytes + w_bytes + b_bytes + acc_bytes + tmp_bytes


def _pick_spatial_tile(hw, n, tk, cout, x_dtype, w_dtype, out_dtype, vmem_budget):
    """Largest lane-dense spatial tile fitting the VMEM budget, capped so the grid keeps
    enough parallel blocks for megacore sharding + pipelining."""
    fixed = _step_vmem_bytes(0, tk, cout, x_dtype, w_dtype, out_dtype)
    per_lane = (_step_vmem_bytes(128, tk, cout, x_dtype, w_dtype, out_dtype) - fixed) // 128
    avail = max(vmem_budget - fixed, 0)
    max_thw = max(128, (avail // max(per_lane, 1)) // 128 * 128)

    # Keep >= ~8 parallel (n, j) blocks (2 TCs on v7x + pipeline overlap), but never
    # shrink below 512 lanes -- 512+ lane tiles already reach ~85% of the HBM roofline.
    target_blocks = 8
    if n * _cdiv(hw, max_thw) < target_blocks:
        j_needed = _cdiv(target_blocks, max(n, 1))
        cap = max(512, _round_up(_cdiv(hw, j_needed), 128))
        max_thw = min(max_thw, cap)

    if max_thw >= hw:
        return hw  # full-extent block is always legal
    return max_thw


# ---------------------------------------------------------------------------
# Wrapper
# ---------------------------------------------------------------------------
def pointwise_conv2d(x_nchw, weight, bias=None):
    """1x1 Conv2d forward, equivalent to nn.Conv2d(Cin, Cout, kernel_size=1).

    x_nchw: (N, Cin, H, W)
    weight: (Cout, Cin, 1, 1)   (PyTorch layout)
    bias:   (Cout,) or None
    returns (N, Cout, H, W)
    """
    N, Cin, H, W = x_nchw.shape
    Cout = weight.shape[0]
    HW = H * W

    # NCHW already has spatial as the trailing (lane) dim -- no transposes needed.
    x = x_nchw.reshape(N, Cin, HW)
    w = weight.reshape(Cout, Cin)                  # keep parameter dtype (matches nn.Conv2d)
    if bias is None:
        bias = jnp.zeros((Cout,), jnp.float32)
    b = bias.reshape(Cout, 1).astype(jnp.float32)  # bias add happens in f32 regardless

    # Generation-aware VMEM sizing: limit ~0.85x physical (headroom for Mosaic scratch),
    # tile budget ~0.7x the limit.  -> ~54/40 MiB on v7x, ~109/76 MiB on v5e/v6e.
    vmem_cap = _vmem_capacity_bytes()
    vmem_limit = min(int(vmem_cap * 0.85), vmem_cap - 8 * 1024 * 1024)
    vmem_budget = int(vmem_limit * 0.7)

    tk = _pick_k_tile(Cin)
    thw = _pick_spatial_tile(HW, N, tk, Cout, x.dtype, w.dtype, x.dtype, vmem_budget)
    grid = (N, _cdiv(HW, thw), _cdiv(Cin, tk))

    out = pl.pallas_call(
        _pointwise_conv_kernel,
        out_shape=jax.ShapeDtypeStruct((N, Cout, HW), x.dtype),
        grid_spec=pltpu.PrefetchScalarGridSpec(
            num_scalar_prefetch=0,
            grid=grid,
            in_specs=[
                pl.BlockSpec((1, tk, thw), lambda n, j, k: (n, k, j)),   # activation tile
                pl.BlockSpec((Cout, tk), lambda n, j, k: (0, k)),        # weight K-slab
                pl.BlockSpec((Cout, 1), lambda n, j, k: (0, 0)),         # bias (f32, resident)
            ],
            out_specs=pl.BlockSpec((1, Cout, thw), lambda n, j, k: (n, 0, j)),
            scratch_shapes=[pltpu.VMEM((Cout, thw), jnp.float32)],       # f32 accumulator
        ),
        compiler_params=pltpu.CompilerParams(
            dimension_semantics=("parallel", "parallel", "arbitrary"),   # k (reduction) last
            vmem_limit_bytes=vmem_limit,
        ),
    )(x, w, b)

    return out.reshape(N, Cout, H, W)


# ---------------------------------------------------------------------------
# Reference + checks
# ---------------------------------------------------------------------------
def _reference(x, weight, bias):
    Cout, Cin = weight.shape[0], weight.shape[1]
    return (jnp.einsum("nchw,oc->nohw", x, weight.reshape(Cout, Cin))
            + bias[None, :, None, None])


if __name__ == "__main__":
    key = jax.random.PRNGKey(0)

    # Primary check: batch=2, Cin=4, Cout=8, 16x16 spatial (shapes consistent with the module).
    N, Cin, Cout, Hs, Ws = 2, 4, 8, 16, 16
    kx, kw, kb = jax.random.split(key, 3)
    bound = 1.0 / (Cin ** 0.5)
    weight = jax.random.uniform(kw, (Cout, Cin, 1, 1), jnp.float32, -bound, bound)
    bias = jax.random.uniform(kb, (Cout,), jnp.float32, -bound, bound)
    x = jax.random.normal(kx, (N, Cin, Hs, Ws), jnp.float32)

    out = pointwise_conv2d(x, weight, bias)
    jax.block_until_ready(out)
    assert out.shape == (N, Cout, Hs, Ws)
    assert jnp.allclose(out, _reference(x, weight, bias), atol=1e-5, rtol=1e-5)

    # Secondary check: awkward channel counts / spatial size (full-extent block path).
    N2, Cin2, Cout2, H2, W2 = 3, 3, 5, 7, 9
    kx2, kw2, kb2 = jax.random.split(jax.random.PRNGKey(0), 3)
    bound2 = 1.0 / (Cin2 ** 0.5)
    weight2 = jax.random.uniform(kw2, (Cout2, Cin2, 1, 1), jnp.float32, -bound2, bound2)
    bias2 = jax.random.uniform(kb2, (Cout2,), jnp.float32, -bound2, bound2)
    x2 = jax.random.normal(kx2, (N2, Cin2, H2, W2), jnp.float32)

    out2 = pointwise_conv2d(x2, weight2, bias2)
    jax.block_until_ready(out2)
    assert out2.shape == (N2, Cout2, H2, W2)
    assert jnp.allclose(out2, _reference(x2, weight2, bias2), atol=1e-5, rtol=1e-5)

    print("KERNEL_OK")
</pallas_src>

<mosaic_0001>
module attributes {stable_mosaic.version = 11 : i64} {
  func.func @_pointwise_conv_kernel(%arg0: i32, %arg1: i32, %arg2: i32, %arg3: memref<1x4x256xf32, #tpu.memory_space<vmem>>, %arg4: memref<8x4xf32, #tpu.memory_space<vmem>>, %arg5: memref<8x1xf32, #tpu.memory_space<vmem>>, %arg6: memref<1x8x256xf32, #tpu.memory_space<vmem>>, %arg7: memref<8x256xf32, #tpu.memory_space<vmem>>) attributes {dimension_semantics = [#tpu.dimension_semantics<parallel>, #tpu.dimension_semantics<parallel>, #tpu.dimension_semantics<arbitrary>], iteration_bounds = array<i64: 2, 1, 1>, scalar_prefetch = 0 : i64, scratch_operands = 1 : i64, tpu.core_type = #tpu.core_type<tc>, window_params = [{transform_indices = @transform_0, window_bounds = array<i64: 1, 4, 256>}, {transform_indices = @transform_1, window_bounds = array<i64: 8, 4>}, {pipeline_mode = #tpu.pipeline_mode<synchronous>, transform_indices = @transform_2, window_bounds = array<i64: 8, 1>}, {transform_indices = @transform_3, window_bounds = array<i64: 1, 8, 256>}]} {
    %c0_i32 = arith.constant 0 : i32
    %0 = arith.cmpi eq, %arg2, %c0_i32 : i32
    %1 = arith.extui %0 : i1 to i32
    %c0_i32_0 = arith.constant 0 : i32
    %2 = arith.cmpi ne, %1, %c0_i32_0 : i32
    scf.if %2 {
      %cst_11 = arith.constant 0.000000e+00 : f32
      %13 = vector.broadcast %cst_11 : f32 to vector<8x256xf32>
      %c0_12 = arith.constant 0 : index
      %c0_13 = arith.constant 0 : index
      %14 = vector.load %arg7[%c0_12, %c0_13] : memref<8x256xf32, #tpu.memory_space<vmem>>, vector<8x256xf32>
      tpu.vector_store %arg7[%c0_12, %c0_13], %13 {strides = array<i32>} : memref<8x256xf32, #tpu.memory_space<vmem>>, vector<8x256xf32>,
    } else {
    }
    %c0 = arith.constant 0 : index
    %c0_1 = arith.constant 0 : index
    %3 = vector.load %arg7[%c0, %c0_1] : memref<8x256xf32, #tpu.memory_space<vmem>>, vector<8x256xf32>
    %c0_2 = arith.constant 0 : index
    %c0_3 = arith.constant 0 : index
    %4 = vector.load %arg4[%c0_2, %c0_3] : memref<8x4xf32, #tpu.memory_space<vmem>>, vector<8x4xf32>
    %c0_4 = arith.constant 0 : index
    %c0_5 = arith.constant 0 : index
    %c0_6 = arith.constant 0 : index
    %5 = vector.load %arg3[%c0_4, %c0_5, %c0_6] : memref<1x4x256xf32, #tpu.memory_space<vmem>>, vector<1x4x256xf32>
    %6 = vector.shape_cast %5 : vector<1x4x256xf32> to vector<4x256xf32>
    %cst = arith.constant dense<0.000000e+00> : vector<8x256xf32>
    %7 = tpu.matmul %4, %6, %cst {dimension_numbers = #tpu.dot_dimension_numbers<[1], [0], [0], [1], [0, 0, 1, 1], [], []>} : vector<8x4xf32>, vector<4x256xf32>, vector<8x256xf32> -> vector<8x256xf32>
    %8 = arith.addf %3, %7 : vector<8x256xf32>
    %c0_7 = arith.constant 0 : index
    %c0_8 = arith.constant 0 : index
    %9 = vector.load %arg7[%c0_7, %c0_8] : memref<8x256xf32, #tpu.memory_space<vmem>>, vector<8x256xf32>
    tpu.vector_store %arg7[%c0_7, %c0_8], %8 {strides = array<i32>} : memref<8x256xf32, #tpu.memory_space<vmem>>, vector<8x256xf32>,
    %c0_i32_9 = arith.constant 0 : i32
    %10 = arith.cmpi eq, %arg2, %c0_i32_9 : i32
    %11 = arith.extui %10 : i1 to i32
    %c0_i32_10 = arith.constant 0 : i32
    %12 = arith.cmpi ne, %11, %c0_i32_10 : i32
    scf.if %12 {
      %c0_11 = arith.constant 0 : index
      %c0_12 = arith.constant 0 : index
      %13 = vector.load %arg7[%c0_11, %c0_12] : memref<8x256xf32, #tpu.memory_space<vmem>>, vector<8x256xf32>
      %c0_13 = arith.constant 0 : index
      %c0_14 = arith.constant 0 : index
      %14 = vector.load %arg5[%c0_13, %c0_14] : memref<8x1xf32, #tpu.memory_space<vmem>>, vector<8x1xf32>
      %15 = vector.broadcast %14 : vector<8x1xf32> to vector<8x256xf32>
      %16 = arith.addf %13, %15 : vector<8x256xf32>
      %c0_15 = arith.constant 0 : index
      %c0_16 = arith.constant 0 : index
      %c0_17 = arith.constant 0 : index
      %17 = vector.load %arg6[%c0_15, %c0_16, %c0_17] : memref<1x8x256xf32, #tpu.memory_space<vmem>>, vector<1x8x256xf32>
      %18 = vector.shape_cast %17 : vector<1x8x256xf32> to vector<8x256xf32>
      %19 = vector.shape_cast %16 : vector<8x256xf32> to vector<1x8x256xf32>
      tpu.vector_store %arg6[%c0_15, %c0_16, %c0_17], %19 {strides = array<i32>} : memref<1x8x256xf32, #tpu.memory_space<vmem>>, vector<1x8x256xf32>,
    } else {
    }
    return
  }
  func.func @transform_0(%arg0: i32, %arg1: i32, %arg2: i32) -> (i32, i32, i32) {
    %c0_i32 = arith.constant 0 : i32
    return %arg0, %arg2, %arg1 : i32, i32, i32
  }
  func.func @transform_1(%arg0: i32, %arg1: i32, %arg2: i32) -> (i32, i32) {
    %c0_i32 = arith.constant 0 : i32
    %c0_i32_0 = arith.constant 0 : i32
    return %c0_i32, %arg2 : i32, i32
  }
  func.func @transform_2(%arg0: i32, %arg1: i32, %arg2: i32) -> (i32, i32) {
    %c0_i32 = arith.constant 0 : i32
    %c0_i32_0 = arith.constant 0 : i32
    %c0_i32_1 = arith.constant 0 : i32
    return %c0_i32, %c0_i32_0 : i32, i32
  }
  func.func @transform_3(%arg0: i32, %arg1: i32, %arg2: i32) -> (i32, i32, i32) {
    %c0_i32 = arith.constant 0 : i32
    %c0_i32_0 = arith.constant 0 : i32
    return %arg0, %c0_i32, %arg1 : i32, i32, i32
  }
}

</mosaic_0001>

<bundles_post_ra>
// kernel: tpu_custom_call.1
= control target key start
LH: loop header
LB: loop body
LE: loop exit
PB: predicated region body
PF: predicated region fallthrough
CT: control target
= control target key end

     0   :  { %8 = vsyncpa [#allocation4], 0  ;;  %s765_s0 = inlined_call_operand.vmem [shape: f32[2,4,256], index: 0, kind: input, shape index: {}]   ;;  %s766_s1 = inlined_call_operand.vmem [shape: f32[8,4], index: 1, kind: input, shape index: {}]   ;;  %s767_s2 = inlined_call_operand.vmem [shape: f32[8,1], index: 2, kind: input, shape index: {}]   ;;  %s768_s3 = inlined_call_operand.hbm [shape: f32[2,8,256], index: 3, kind: output, shape index: {}]  }
   0x1   :  { %10 = vsyncpa [#allocation4 + $0x1], 0  ;;  %s647_s12 = smov 0   ;;  %s649_s13 = smov 0  }
   0x2   :  { %s651_s14 = smov 0   ;;  %s653_s15 = smov 0  }
   0x3   :  { %s655_s16 = smov 0   ;;  %s657_s17 = smov 0  }
   0x4 LB: > { %s466_s18 = sadd.s32 4294967295, %s622_s17   ;;  %s467_s19 = sadd.s32 4294967294, %s622_s17   ;;  %s622_s17 = sphi %s657_s17, %s16_s17   ;;  %s618_s16 = sphi %s655_s16, %s775_s16   ;;  %s614_s15 = sphi %s653_s15, %s774_s15   ;;  %s610_s14 = sphi %s651_s14, %s773_s14   ;;  %s606_s13 = sphi %s649_s13, %s772_s13   ;;  %s602_s12 = sphi %s647_s12, %s771_s12  }
   0x5   : > { %s35_s20 = sadd.s32 1, %s618_s16  ;;  %s121_s21 = sadd.s32 1, %s610_s14 }
   0x6   : > { %p37_p0 = scmp.ge.s32.totalorder %s35_s20, 2  ;;  %p131_p1 = scmp.ne.s32.totalorder %s610_s14, %s606_s13 }
   0x7   : > { %p132_p2 = scmp.eq.s32.totalorder %s466_s18, 1  ;;  %p137_p3 = scmp.ne.s32.totalorder %s606_s13, %s602_s12 }
   0x8   : > { %s777_s20 = smov (%p37_p0, %s35_s20), 0  ;;  %p138_p5 = scmp.eq.s32.totalorder %s467_s19, 1 }
   0x9   : > { %p687_p4 = por %p132_p2, %p131_p1  ;;  %s116_s23 = ssub.s32 %s618_s16, %s777_s20 }
   0xa   : > { %p471_p6 = scmp.ge.s32.totalorder %s622_s17, 1  ;;  %p119_p7 = scmp.eq.s32.totalorder %s116_s23, 0 }
   0xb   : > { %p694_p8 = por %p138_p5, %p137_p3  ;;  %p183_p9 = scmp.lt.s32.totalorder %s622_s17, 3 }
   0xc   : > { %s700_s25 = scalar_select %p119_p7, %s610_s14, %s121_s21  }
   0xd   : > { %p184_p10 = pnand %p471_p6, %p183_p9 }
   0xe   : > { %p220_p11 = scmp.lt.s32.totalorder (!%p184_p10), %s614_s15, 1  ;;  %v624_v0 = vmov (!%p184_p10), 0.0   ;;  %v625_v1 = vmov (!%p184_p10), 0   ;;  %v339_v2 = vld [vmem:[%s767_s2] sm:$0xff] (!%p184_p10)  ;;  %vm254_vm0 = vcmask (!%p184_p10), 1043456   ;;  %vm250_vm1 = vcmask (!%p184_p10), 31744  }
   0xf   : > { %187 = sbr.rel (%p184_p10) target bundleno = 260 (0x104), region = 32  ;;  %323 = vmatprep.mubr.f32.mxu0 (!%p184_p10), %v624_v0  ;;  %542 = vset.pattern.permute.xlu0 (!%p184_p10), %v625_v1  ;;  %v246_v5 = vld [vmem:[%s766_s1] sm:$0xff] (!%p184_p10)  ;;  %s216_s8 = sand.u32 (!%p184_p10), 1, %s606_s13  }
  0x10   : > { %342 = vperm.xlu0 (!%p184_p10), %542, %v339_v2   ;;  %s472_s9 = sshll.u32 (!%p184_p10), %s216_s8, 4  ;;  %s484_s10 = sshll.u32 (!%p184_p10), %s614_s15, 8 }
  0x11   : > { %s218_s11 = scalar_lea.vmem (!%p184_p10), [#allocation3], %s472_s9  ;;  %s718_s23 = scalar_lea.hbm (!%p184_p10), %s768_s3, %s484_s10 }
  0x12   : > { %s366_s18 = sshll.u32 (!%p184_p10), %s218_s11, 4  ;;  %s350_s26 = scalar_lea.sflag (!%p184_p10), [#allocation4], %s216_s8  ;;  %s720_s18 = int_to_ptr.vmem [resolvable:$true] %s366_s18 }
  0x13   : > { %s626_s27 = smov (!%p184_p10), [#allocation3]  }
  0x16   : > { %s221_s28 = scalar_select %p220_p11, %s614_s15, 1 }
  0x17   : > { %s544_s15 = scalar_lea.vmem %s720_s18, 256 }
  0x18   : > { %s483_s29 = sshll.u32 %s221_s28, 3  ;;  %p545_p12 = scmp.ne.s32.totalorder %s720_s18, %s544_s15 }
  0x19   : > { %s231_s5 = scalar_lea.vmem %s765_s0, %s483_s29  ;;  %s548_s28 = sshll.u32 %s626_s27, 4  ;;  %s549_s28 = int_to_ptr.vmem [resolvable:$false] %s548_s28 }
  0x1a   : > { %v247_v3 = vld [vmem:[%s231_s5] sm:$0xff]  ;;  %p546_p13 = pnand %p545_p12, %p687_p4  ;;  %s550_s29 = scalar_lea.vmem %s549_s28, 512 }
  0x1b   : > { %v249_v4 = vcombine.high %v247_v3, %v247_v3  ;;  %p551_p1 = scmp.lt.s32.totalorder %s720_s18, %s549_s28  ;;  %p552_p2 = scmp.lt.s32.totalorder %s550_s29, %s544_s15 }
  0x1c   : > { %p547_p0 = pneg %p546_p13 }
  0x1d   : > { %475 = vmatprep.subr.msk.mxu0 %vm254_vm0, %v249_v4  ;;  %p553_p3 = por %p552_p2, %p551_p1 }
  0x1e   : > { %476 = vmatpush1.msk.msra.mxu0 %vm254_vm0, %v247_v3 }
  0x1f   : > { %477 = vmatmul.mubr.msk.f32.vlgmr.msra.gmra.mrb[0].mxu0 %vm250_vm1, %v246_v5  ;;  %p554_p5 = pnand %p553_p3, %p547_p0 }
  0x8f   : > { %v343_v6 = vpop.permute.xlu0 %342 }
  0xf2   : > { %v325_v7 = vpop.f32.mrb[0].mxu0 }
  0xf3   : > { %v345_v8 = vadd.f32 %v343_v6, %v325_v7  ;;  %v327_v9 = vpop.f32.mrb[1].mxu0 }
  0xf4   : > { %v346_v10 = vadd.f32 %v343_v6, %v327_v9 }
  0xf5   : > { %347 = vst [vmem:[%s218_s11] sm:$0xff] %v345_v8 }
  0xf6   : > { %348 = vst [vmem:[%s218_s11 + $0x8] sm:$0xff] %v346_v10 }
  0xf7   : > { %557 = shalt.err (!%p554_p5)
}
  0xf8   : > { %s558_s30 = scalar_lea.hbm %s718_s23, 256  ;;  %s562_s6 = scalar_lea.hbm %s768_s3, 512 }
  0xf9   : > { %p559_p6 = scmp.ne.s32.totalorder %s718_s23, %s558_s30  ;;  %p563_p10 = scmp.lt.u32.totalorder %s718_s23, %s768_s3 }
  0xfa   : > { %p564_p11 = scmp.lt.u32.totalorder %s562_s6, %s558_s30  ;;  %p566_p13 = scmp.lt.u32.totalorder %s558_s30, %s718_s23 }
  0xfb   : > { %p560_p7 = pnand %p559_p6, %p687_p4 }
  0xfc   : > { %p565_p12 = por %p564_p11, %p563_p10 }
  0xfd   : > { %p561_p9 = pneg %p560_p7 }
  0xfe   : > { %p567_p0 = por %p566_p13, %p565_p12 }
 0x100   : > { %p568_p1 = pnand %p567_p0, %p561_p9 }
 0x102   : > { %571 = shalt.err (!%p568_p1)
}
 0x103   : > { %485 = dma.vmem_to_hbm [thread:$0]  (%p687_p4), %s720_s18, 256, %s718_s23, %s350_s26  }
 0x104 PF: > { %p491_p2 = scmp.ge.s32.totalorder %s622_s17, 2  ;;  %s378_s9 = sand.u32 1, %s602_s12  }
 0x105   : > { %s379_s10 = scalar_lea.sflag [#allocation4], %s378_s9 }
 0x106   : > { %p488_p3 = pnand %p491_p2, %p694_p8 }
 0x108   : > { %597 = dma.done.wait (!%p488_p3), %s379_s10, 256  }
 0x109   : > { %599 = vsyncadd (!%p488_p3), %s379_s10, 4294967040  ;;  %s16_s17 = sadd.s32 1, %s622_s17   ;;  %s771_s12 = smov %s606_s13 }
 0x10a   : > { %p13_p5 = scmp.ge.s32.totalorder %s16_s17, 4   ;;  %s772_s13 = smov %s610_s14 }
 0x10b   : > { %s773_s14 = smov %s700_s25  ;;  %s774_s15 = smov %s618_s16 }
 0x10c   : > { %s775_s16 = smov %s777_s20  ;;  %15 = sbr.rel (!%p13_p5) target bundleno = 4 (0x4), region = 78 }
 0x113   :  { %384 = vsyncpa [#allocation4], 1 }
 0x114   :  { %386 = vsyncpa [#allocation4 + $0x1], 1 }

</bundles_post_ra>
